<compile_context>
chip_gen: v7x
topology: tpu7x:2x2x1
jax: 0.10.0
libtpu: 0.0.40
codegen_flags: <defaults>
</compile_context>

<pallas_src>
import functools

import jax
import jax.numpy as jnp
from jax import lax
from jax.experimental import pallas as pl
from jax.experimental.pallas import tpu as pltpu


LANE = 128      # TPU lane width (class-dim padding)
MXU_K = 256     # contraction alignment for the 256-wide MXU (v6e/v7x); fine on v5e too
MAX_TL = 512    # sequence tile cap (review: keep per-step DMA/compute above the overhead floor)


def _round_up(x, m):
    return (x + m - 1) // m * m


def meanmax_kernel(ids_ref, len_ref, sel_ref, table_ref, wm_ref, wx_ref, b_ref,
                   out_ref, sum_acc, max_acc, *, mask_seq):
    """One (batch-tile, seq-tile) grid step.

    ids_ref   : (TB*TL, 1) int32    tile-contiguous token-id column (alignment padding = -1)
    len_ref   : (TB, 1)    float32  per-sample sequence lengths
    sel_ref   : (TB, TB*TL) float32 per-batch-row summation matrix (resident)
    table_ref : (Vp, E)    bfloat16 zero-padded embedding table (resident)
    wm_ref    : (E, Cp)    float32  head weight acting on the mean half (resident)
    wx_ref    : (E, Cp)    float32  head weight acting on the max half (resident)
    b_ref     : (1, Cp)    float32  head bias (resident)
    out_ref   : (TB, Cp)   float32  logits (lane-dense; sliced to C in the wrapper)
    sum_acc   : (TB, E)    float32  running sum over the sequence axis (VMEM scratch)
    max_acc   : (TB, E)    float32  running max over the sequence axis (VMEM scratch)
    """
    li = pl.program_id(1)
    n_l = pl.num_programs(1)
    n_rows = ids_ref.shape[0]
    tb = sel_ref.shape[0]
    tl = n_rows // tb
    Vp, E = table_ref.shape

    # ---- init accumulators on the first seq step ---------------------------
    @pl.when(li == 0)
    def _init():
        sum_acc[...] = jnp.zeros_like(sum_acc)
        max_acc[...] = jnp.full_like(max_acc, -jnp.inf)

    # ---- 2-D one-hot + bf16 MXU lookup matmul -------------------------------
    ids_col = ids_ref[...]                                           # (TB*TL, 1), pad rows = -1
    iota_v = lax.broadcasted_iota(jnp.int32, (n_rows, Vp), 1)
    onehot = (ids_col == iota_v).astype(jnp.bfloat16)                # exact 0/1; pad rows all-zero
    emb = jnp.dot(onehot, table_ref[...],
                  preferred_element_type=jnp.float32)                # (TB*TL, E) f32 accum

    # ---- sequence sum on the MXU (selector matmul), not the VPU/XLU ---------
    sum_acc[...] += jnp.dot(sel_ref[...], emb,
                            preferred_element_type=jnp.float32)      # (TB, E)

    # ---- running max over the sequence --------------------------------------
    emb_m = emb
    if mask_seq:
        # Only alignment padding beyond the true maxlen is masked; the module's own padding
        # tokens are intentionally included, exactly as in the torch forward.
        emb_m = jnp.where(ids_col >= 0, emb, -jnp.inf)
    max_acc[...] = jnp.maximum(max_acc[...],
                               jnp.max(emb_m.reshape(tb, tl, E), axis=1))

    # ---- finalize on the last seq step: mean divide, split head matmul ------
    @pl.when(li == n_l - 1)
    def _finalize():
        means = sum_acc[...] / len_ref[...]                          # exact f32 divide
        logits = (jnp.dot(means, wm_ref[...], preferred_element_type=jnp.float32)
                  + jnp.dot(max_acc[...], wx_ref[...], preferred_element_type=jnp.float32)
                  + b_ref[...])
        out_ref[...] = logits.astype(out_ref.dtype)                  # lane-dense store


def meanmax_dnn_forward(x, lengths, emb_table, w_final, b_final):
    """JAX wrapper.

    x         : (B, L)  int   token ids
    lengths   : (B,)    int   per-sample lengths (the `lengths[1]` tensor in torch)
    emb_table : (V, E)  float embedding weights
    w_final   : (C, 2E) float torch-layout Linear weight
    b_final   : (C,)    float Linear bias
    returns   : (logits (B, C), zeros (2, 4)) — matching the torch module.
    """
    B, L = x.shape
    V, E = emb_table.shape
    C = b_final.shape[0]

    # ---- tile sizes ----------------------------------------------------------
    if L <= MAX_TL:
        L_pad = _round_up(L, 8)          # sublane-aligned single seq tile
        TL = L_pad
    else:
        TL = MAX_TL                      # big seq tile: fewer grid steps, taller MXU M dim
        L_pad = _round_up(L, TL)

    if B <= 8:
        TB, B_pad = B, B                 # single full-dim batch tile
    else:
        B_pad = _round_up(B, 8)
        # Largest multiple-of-8 tile (<=32) that still leaves >= 2 batch tiles, so the
        # "parallel" batch axis can shard across v7x's two TensorCores (free on v5e/v6e).
        TB = 8
        for cand in (16, 24, 32):
            if B_pad % cand == 0 and B_pad // cand >= 2:
                TB = cand

    V_pad = _round_up(V, MXU_K)          # 256-aligned contraction (v6e/v7x MXU)
    C_pad = _round_up(C, LANE)           # lane-dense output stores

    n_bt = B_pad // TB
    n_lt = L_pad // TL
    mask_seq = (L_pad != L)

    # ---- inputs --------------------------------------------------------------
    ids = x.astype(jnp.int32)
    if (B_pad, L_pad) != (B, L):
        ids = jnp.pad(ids, ((0, B_pad - B), (0, L_pad - L)), constant_values=-1)

    # Tile-contiguous id column: row order = (batch_tile, seq_tile, row_in_tile, pos_in_tile),
    # so each grid step reads one contiguous (TB*TL, 1) block and builds the one-hot in 2-D
    # without any in-kernel relayout of the ids.
    ids_col = (ids.reshape(n_bt, TB, n_lt, TL)
                  .transpose(0, 2, 1, 3)
                  .reshape(n_bt * n_lt * TB * TL, 1))

    len_f = lengths.astype(jnp.float32).reshape(-1, 1)
    if B_pad != B:
        # Padded batch rows get length 1.0 only to avoid div-by-zero; they are sliced off below.
        len_f = jnp.pad(len_f, ((0, B_pad - B), (0, 0)), constant_values=1.0)

    # Per-batch-row summation matrix for the MXU sequence sum: sel[b, j] = 1 iff j // TL == b.
    sel = (jnp.arange(TB, dtype=jnp.int32)[:, None]
           == (jnp.arange(TB * TL, dtype=jnp.int32) // TL)[None, :]).astype(jnp.float32)

    # bf16 embedding table for the MXU lookup matmul; zero-pad the vocab rows.
    table = emb_table.astype(jnp.bfloat16)
    if V_pad != V:
        table = jnp.pad(table, ((0, V_pad - V), (0, 0)))

    # final.weight is (C, 2E) in torch layout; pre-split into the mean / max halves so the
    # finalize step is two matmuls with no in-kernel concatenate.  Class dim padded to 128.
    w = w_final.astype(jnp.float32)
    w_mean = w[:, :E].T                                               # (E, C)
    w_max = w[:, E:].T                                                # (E, C)
    b_vec = b_final.astype(jnp.float32).reshape(1, C)
    if C_pad != C:
        w_mean = jnp.pad(w_mean, ((0, 0), (0, C_pad - C)))
        w_max = jnp.pad(w_max, ((0, 0), (0, C_pad - C)))
        b_vec = jnp.pad(b_vec, ((0, 0), (0, C_pad - C)))

    kernel = functools.partial(meanmax_kernel, mask_seq=mask_seq)

    logits_padded = pl.pallas_call(
        kernel,
        out_shape=jax.ShapeDtypeStruct((B_pad, C_pad), jnp.float32),
        grid_spec=pltpu.PrefetchScalarGridSpec(
            num_scalar_prefetch=0,
            grid=(n_bt, n_lt),
            in_specs=[
                pl.BlockSpec((TB * TL, 1), lambda b, l: (b * n_lt + l, 0)),  # id column
                pl.BlockSpec((TB, 1), lambda b, l: (b, 0)),                  # lengths
                # Resident inputs (constant index maps).  For large tables these should be
                # single-buffered (pipeline_mode=pl.Buffered(1)) or replaced by the DMA-gather
                # path; at these shapes the default double-buffering is a few KB.
                pl.BlockSpec((TB, TB * TL), lambda b, l: (0, 0)),            # sel (sum matmul)
                pl.BlockSpec((V_pad, E), lambda b, l: (0, 0)),               # embedding table
                pl.BlockSpec((E, C_pad), lambda b, l: (0, 0)),               # head weight (mean)
                pl.BlockSpec((E, C_pad), lambda b, l: (0, 0)),               # head weight (max)
                pl.BlockSpec((1, C_pad), lambda b, l: (0, 0)),               # head bias
            ],
            out_specs=pl.BlockSpec((TB, C_pad), lambda b, l: (b, 0)),
            scratch_shapes=[
                pltpu.VMEM((TB, E), jnp.float32),                            # running sum
                pltpu.VMEM((TB, E), jnp.float32),                            # running max
            ],
        ),
        compiler_params=pltpu.CompilerParams(
            dimension_semantics=("parallel", "arbitrary"),
            # Generous on v5e/v6e (128 MiB physical) while leaving headroom on v7x (64 MiB);
            # re-derive if the resident table / tiles grow (or switch to the DMA-gather path).
            vmem_limit_bytes=48 * 1024 * 1024,
        ),
    )(ids_col, len_f, sel, table, w_mean, w_max, b_vec)

    logits = logits_padded[:B, :C]
    return logits, jnp.zeros((2, 4), dtype=jnp.float32)


def _reference_forward(x, lengths, emb_table, w_final, b_final):
    """Pure-JAX reference mirroring the torch forward.

    Uses the same bf16-rounded embedding table as the kernel (the one-hot lookup matmul is then
    exact per element); remaining differences are f32 accumulation order / MXU f32 matmul
    rounding in the sum and head, covered by the test tolerance.
    """
    table = emb_table.astype(jnp.bfloat16).astype(jnp.float32)
    emb = table[x]                                       # (B, L, E)
    sums = jnp.sum(emb, axis=1)
    means = sums / lengths.astype(jnp.float32)[:, None]
    maxed = jnp.max(emb, axis=1)
    rep = jnp.concatenate([means, maxed], axis=1)        # (B, 2E)
    return rep @ w_final.astype(jnp.float32).T + b_final.astype(jnp.float32)


if __name__ == "__main__":
    key = jax.random.PRNGKey(0)
    ks = jax.random.split(key, 8)

    # ---- config 1: small shapes consistent with the module ------------------
    B, L, V, E, C = 2, 8, 50, 32, 5
    emb_table = jax.random.normal(ks[0], (V, E), dtype=jnp.float32)
    x = jax.random.randint(ks[1], (B, L), 0, V, dtype=jnp.int32)
    lengths = jnp.array([8, 5], dtype=jnp.int32)
    w_final = jax.random.normal(ks[2], (C, 2 * E), dtype=jnp.float32) * 0.1
    b_final = jax.random.normal(ks[3], (C,), dtype=jnp.float32) * 0.1

    logits, extra = meanmax_dnn_forward(x, lengths, emb_table, w_final, b_final)
    logits = jax.block_until_ready(logits)
    extra = jax.block_until_ready(extra)
    ref = _reference_forward(x, lengths, emb_table, w_final, b_final)
    assert logits.shape == (B, C) and extra.shape == (2, 4)
    assert jnp.allclose(logits, ref, atol=1e-2, rtol=1e-2), (logits, ref)

    # ---- config 2: long sequence -> multi-tile seq streaming + masking ------
    B2, L2, V2, C2 = 4, 600, 300, 5
    emb_table2 = jax.random.normal(ks[4], (V2, E), dtype=jnp.float32)
    x2 = jax.random.randint(ks[5], (B2, L2), 0, V2, dtype=jnp.int32)
    lengths2 = jnp.array([600, 450, 128, 333], dtype=jnp.int32)
    w_final2 = jax.random.normal(ks[6], (C2, 2 * E), dtype=jnp.float32) * 0.1
    b_final2 = jax.random.normal(ks[7], (C2,), dtype=jnp.float32) * 0.1

    logits2, extra2 = meanmax_dnn_forward(x2, lengths2, emb_table2, w_final2, b_final2)
    logits2 = jax.block_until_ready(logits2)
    ref2 = _reference_forward(x2, lengths2, emb_table2, w_final2, b_final2)
    assert logits2.shape == (B2, C2) and extra2.shape == (2, 4)
    assert jnp.allclose(logits2, ref2, atol=1e-2, rtol=1e-2), (logits2, ref2)

    print("KERNEL_OK")
</pallas_src>

<mosaic_0001>
module attributes {stable_mosaic.version = 11 : i64} {
  func.func @meanmax_kernel(%arg0: i32, %arg1: i32, %arg2: memref<16x1xi32, #tpu.memory_space<vmem>>, %arg3: memref<2x1xf32, #tpu.memory_space<vmem>>, %arg4: memref<2x16xf32, #tpu.memory_space<vmem>>, %arg5: memref<256x32xbf16, #tpu.memory_space<vmem>>, %arg6: memref<32x128xf32, #tpu.memory_space<vmem>>, %arg7: memref<32x128xf32, #tpu.memory_space<vmem>>, %arg8: memref<1x128xf32, #tpu.memory_space<vmem>>, %arg9: memref<2x128xf32, #tpu.memory_space<vmem>>, %arg10: memref<2x32xf32, #tpu.memory_space<vmem>>, %arg11: memref<2x32xf32, #tpu.memory_space<vmem>>) attributes {dimension_semantics = [#tpu.dimension_semantics<parallel>, #tpu.dimension_semantics<arbitrary>], iteration_bounds = array<i64: 1, 1>, scalar_prefetch = 0 : i64, scratch_operands = 2 : i64, tpu.core_type = #tpu.core_type<tc>, window_params = [{transform_indices = @transform_0, window_bounds = array<i64: 16, 1>}, {transform_indices = @transform_1, window_bounds = array<i64: 2, 1>}, {pipeline_mode = #tpu.pipeline_mode<synchronous>, transform_indices = @transform_2, window_bounds = array<i64: 2, 16>}, {pipeline_mode = #tpu.pipeline_mode<synchronous>, transform_indices = @transform_3, window_bounds = array<i64: 256, 32>}, {pipeline_mode = #tpu.pipeline_mode<synchronous>, transform_indices = @transform_4, window_bounds = array<i64: 32, 128>}, {pipeline_mode = #tpu.pipeline_mode<synchronous>, transform_indices = @transform_5, window_bounds = array<i64: 32, 128>}, {pipeline_mode = #tpu.pipeline_mode<synchronous>, transform_indices = @transform_6, window_bounds = array<i64: 1, 128>}, {transform_indices = @transform_7, window_bounds = array<i64: 2, 128>}]} {
    %c0_i32 = arith.constant 0 : i32
    %0 = arith.cmpi eq, %arg1, %c0_i32 : i32
    %1 = arith.extui %0 : i1 to i32
    %c0_i32_0 = arith.constant 0 : i32
    %2 = arith.cmpi ne, %1, %c0_i32_0 : i32
    scf.if %2 {
      %cst_18 = arith.constant 0.000000e+00 : f32
      %25 = vector.broadcast %cst_18 : f32 to vector<2x32xf32>
      %c0_19 = arith.constant 0 : index
      %c0_20 = arith.constant 0 : index
      %26 = vector.load %arg10[%c0_19, %c0_20] : memref<2x32xf32, #tpu.memory_space<vmem>>, vector<2x32xf32>
      tpu.vector_store %arg10[%c0_19, %c0_20], %25 {strides = array<i32>} : memref<2x32xf32, #tpu.memory_space<vmem>>, vector<2x32xf32>,
      %cst_21 = arith.constant 0xFF800000 : f32
      %27 = vector.broadcast %cst_21 : f32 to vector<2x32xf32>
      %c0_22 = arith.constant 0 : index
      %c0_23 = arith.constant 0 : index
      %28 = vector.load %arg11[%c0_22, %c0_23] : memref<2x32xf32, #tpu.memory_space<vmem>>, vector<2x32xf32>
      tpu.vector_store %arg11[%c0_22, %c0_23], %27 {strides = array<i32>} : memref<2x32xf32, #tpu.memory_space<vmem>>, vector<2x32xf32>,
    } else {
    }
    %c0 = arith.constant 0 : index
    %c0_1 = arith.constant 0 : index
    %3 = vector.load %arg2[%c0, %c0_1] : memref<16x1xi32, #tpu.memory_space<vmem>>, vector<16x1xi32>
    %4 = tpu.iota {dimensions = array<i32: 1>} : vector<16x256xi32>
    %5 = vector.broadcast %3 : vector<16x1xi32> to vector<16x256xi32>
    %6 = arith.cmpi eq, %5, %4 : vector<16x256xi32>
    %7 = arith.extui %6 : vector<16x256xi1> to vector<16x256xi32>
    %8 = arith.sitofp %7 : vector<16x256xi32> to vector<16x256xf32>
    %9 = arith.truncf %8 : vector<16x256xf32> to vector<16x256xbf16>
    %c0_2 = arith.constant 0 : index
    %c0_3 = arith.constant 0 : index
    %10 = vector.load %arg5[%c0_2, %c0_3] : memref<256x32xbf16, #tpu.memory_space<vmem>>, vector<256x32xbf16>
    %cst = arith.constant dense<0.000000e+00> : vector<16x32xf32>
    %11 = tpu.matmul %9, %10, %cst {dimension_numbers = #tpu.dot_dimension_numbers<[1], [0], [0], [1], [0, 0, 1, 1], [], []>} : vector<16x256xbf16>, vector<256x32xbf16>, vector<16x32xf32> -> vector<16x32xf32>
    %c0_4 = arith.constant 0 : index
    %c0_5 = arith.constant 0 : index
    %12 = vector.load %arg10[%c0_4, %c0_5] : memref<2x32xf32, #tpu.memory_space<vmem>>, vector<2x32xf32>
    %c0_6 = arith.constant 0 : index
    %c0_7 = arith.constant 0 : index
    %13 = vector.load %arg4[%c0_6, %c0_7] : memref<2x16xf32, #tpu.memory_space<vmem>>, vector<2x16xf32>
    %cst_8 = arith.constant dense<0.000000e+00> : vector<2x32xf32>
    %14 = tpu.matmul %13, %11, %cst_8 {dimension_numbers = #tpu.dot_dimension_numbers<[1], [0], [0], [1], [0, 0, 1, 1], [], []>} : vector<2x16xf32>, vector<16x32xf32>, vector<2x32xf32> -> vector<2x32xf32>
    %15 = arith.addf %12, %14 : vector<2x32xf32>
    %c0_9 = arith.constant 0 : index
    %c0_10 = arith.constant 0 : index
    %16 = vector.load %arg10[%c0_9, %c0_10] : memref<2x32xf32, #tpu.memory_space<vmem>>, vector<2x32xf32>
    tpu.vector_store %arg10[%c0_9, %c0_10], %15 {strides = array<i32>} : memref<2x32xf32, #tpu.memory_space<vmem>>, vector<2x32xf32>,
    %c0_11 = arith.constant 0 : index
    %c0_12 = arith.constant 0 : index
    %17 = vector.load %arg11[%c0_11, %c0_12] : memref<2x32xf32, #tpu.memory_space<vmem>>, vector<2x32xf32>
    %18 = vector.shape_cast %11 : vector<16x32xf32> to vector<2x8x32xf32>
    %cst_13 = arith.constant dense<0xFF800000> : vector<2x32xf32>
    %19 = vector.multi_reduction <maximumf>, %18, %cst_13 [1] : vector<2x8x32xf32> to vector<2x32xf32>
    %20 = arith.maximumf %17, %19 : vector<2x32xf32>
    %c0_14 = arith.constant 0 : index
    %c0_15 = arith.constant 0 : index
    %21 = vector.load %arg11[%c0_14, %c0_15] : memref<2x32xf32, #tpu.memory_space<vmem>>, vector<2x32xf32>
    tpu.vector_store %arg11[%c0_14, %c0_15], %20 {strides = array<i32>} : memref<2x32xf32, #tpu.memory_space<vmem>>, vector<2x32xf32>,
    %c0_i32_16 = arith.constant 0 : i32
    %22 = arith.cmpi eq, %arg1, %c0_i32_16 : i32
    %23 = arith.extui %22 : i1 to i32
    %c0_i32_17 = arith.constant 0 : i32
    %24 = arith.cmpi ne, %23, %c0_i32_17 : i32
    scf.if %24 {
      %c0_18 = arith.constant 0 : index
      %c0_19 = arith.constant 0 : index
      %25 = vector.load %arg10[%c0_18, %c0_19] : memref<2x32xf32, #tpu.memory_space<vmem>>, vector<2x32xf32>
      %c0_20 = arith.constant 0 : index
      %c0_21 = arith.constant 0 : index
      %26 = vector.load %arg3[%c0_20, %c0_21] : memref<2x1xf32, #tpu.memory_space<vmem>>, vector<2x1xf32>
      %27 = vector.broadcast %26 : vector<2x1xf32> to vector<2x32xf32>
      %28 = arith.divf %25, %27 : vector<2x32xf32>
      %c0_22 = arith.constant 0 : index
      %c0_23 = arith.constant 0 : index
      %29 = vector.load %arg6[%c0_22, %c0_23] : memref<32x128xf32, #tpu.memory_space<vmem>>, vector<32x128xf32>
      %cst_24 = arith.constant dense<0.000000e+00> : vector<2x128xf32>
      %30 = tpu.matmul %28, %29, %cst_24 {dimension_numbers = #tpu.dot_dimension_numbers<[1], [0], [0], [1], [0, 0, 1, 1], [], []>} : vector<2x32xf32>, vector<32x128xf32>, vector<2x128xf32> -> vector<2x128xf32>
      %c0_25 = arith.constant 0 : index
      %c0_26 = arith.constant 0 : index
      %31 = vector.load %arg11[%c0_25, %c0_26] : memref<2x32xf32, #tpu.memory_space<vmem>>, vector<2x32xf32>
      %c0_27 = arith.constant 0 : index
      %c0_28 = arith.constant 0 : index
      %32 = vector.load %arg7[%c0_27, %c0_28] : memref<32x128xf32, #tpu.memory_space<vmem>>, vector<32x128xf32>
      %cst_29 = arith.constant dense<0.000000e+00> : vector<2x128xf32>
      %33 = tpu.matmul %31, %32, %cst_29 {dimension_numbers = #tpu.dot_dimension_numbers<[1], [0], [0], [1], [0, 0, 1, 1], [], []>} : vector<2x32xf32>, vector<32x128xf32>, vector<2x128xf32> -> vector<2x128xf32>
      %34 = arith.addf %30, %33 : vector<2x128xf32>
      %c0_30 = arith.constant 0 : index
      %c0_31 = arith.constant 0 : index
      %35 = vector.load %arg8[%c0_30, %c0_31] : memref<1x128xf32, #tpu.memory_space<vmem>>, vector<1x128xf32>
      %36 = vector.broadcast %35 : vector<1x128xf32> to vector<2x128xf32>
      %37 = arith.addf %34, %36 : vector<2x128xf32>
      %c0_32 = arith.constant 0 : index
      %c0_33 = arith.constant 0 : index
      %38 = vector.load %arg9[%c0_32, %c0_33] : memref<2x128xf32, #tpu.memory_space<vmem>>, vector<2x128xf32>
      tpu.vector_store %arg9[%c0_32, %c0_33], %37 {strides = array<i32>} : memref<2x128xf32, #tpu.memory_space<vmem>>, vector<2x128xf32>,
    } else {
    }
    return
  }
  func.func @transform_0(%arg0: i32, %arg1: i32) -> (i32, i32) {
    %c1_i32 = arith.constant 1 : i32
    %0 = arith.muli %arg0, %c1_i32 : i32
    %1 = arith.addi %0, %arg1 : i32
    %c0_i32 = arith.constant 0 : i32
    %c0_i32_0 = arith.constant 0 : i32
    return %1, %c0_i32 : i32, i32
  }
  func.func @transform_1(%arg0: i32, %arg1: i32) -> (i32, i32) {
    %c0_i32 = arith.constant 0 : i32
    %c0_i32_0 = arith.constant 0 : i32
    return %arg0, %c0_i32 : i32, i32
  }
  func.func @transform_2(%arg0: i32, %arg1: i32) -> (i32, i32) {
    %c0_i32 = arith.constant 0 : i32
    %c0_i32_0 = arith.constant 0 : i32
    %c0_i32_1 = arith.constant 0 : i32
    return %c0_i32, %c0_i32_0 : i32, i32
  }
  func.func @transform_3(%arg0: i32, %arg1: i32) -> (i32, i32) {
    %c0_i32 = arith.constant 0 : i32
    %c0_i32_0 = arith.constant 0 : i32
    %c0_i32_1 = arith.constant 0 : i32
    return %c0_i32, %c0_i32_0 : i32, i32
  }
  func.func @transform_4(%arg0: i32, %arg1: i32) -> (i32, i32) {
    %c0_i32 = arith.constant 0 : i32
    %c0_i32_0 = arith.constant 0 : i32
    %c0_i32_1 = arith.constant 0 : i32
    return %c0_i32, %c0_i32_0 : i32, i32
  }
  func.func @transform_5(%arg0: i32, %arg1: i32) -> (i32, i32) {
    %c0_i32 = arith.constant 0 : i32
    %c0_i32_0 = arith.constant 0 : i32
    %c0_i32_1 = arith.constant 0 : i32
    return %c0_i32, %c0_i32_0 : i32, i32
  }
  func.func @transform_6(%arg0: i32, %arg1: i32) -> (i32, i32) {
    %c0_i32 = arith.constant 0 : i32
    %c0_i32_0 = arith.constant 0 : i32
    %c0_i32_1 = arith.constant 0 : i32
    return %c0_i32, %c0_i32_0 : i32, i32
  }
  func.func @transform_7(%arg0: i32, %arg1: i32) -> (i32, i32) {
    %c0_i32 = arith.constant 0 : i32
    %c0_i32_0 = arith.constant 0 : i32
    return %arg0, %c0_i32 : i32, i32
  }
}

</mosaic_0001>

<bundles_post_ra>
// kernel: tpu_custom_call.1
= control target key start
LH: loop header
LB: loop body
LE: loop exit
PB: predicated region body
PF: predicated region fallthrough
CT: control target
= control target key end

     0   :  { %v707_v1 = vmov 0   ;;  %s869_s0 = inlined_call_operand.vmem [shape: s32[16,1], index: 0, kind: input, shape index: {}]   ;;  %s870_s1 = inlined_call_operand.vmem [shape: f32[2,1], index: 1, kind: input, shape index: {}]   ;;  %s871_s2 = inlined_call_operand.vmem [shape: f32[2,16], index: 2, kind: input, shape index: {}]   ;;  %s872_s3 = inlined_call_operand.vmem [shape: bf16[256,32], index: 3, kind: input, shape index: {}]   ;;  %s873_s4 = inlined_call_operand.vmem [shape: f32[32,128], index: 4, kind: input, shape index: {}]   ;;  %s874_s5 = inlined_call_operand.vmem [shape: f32[32,128], index: 5, kind: input, shape index: {}]   ;;  %s875_s6 = inlined_call_operand.vmem [shape: f32[1,128], index: 6, kind: input, shape index: {}]   ;;  %s876_s7 = inlined_call_operand.hbm [shape: f32[2,128], index: 7, kind: output, shape index: {}]  }
   0x1   :  { %v57_v0 = vld [vmem:[%s869_s0] sm:$0xff]  ;;  %663 = vset.pattern.permute.xlu0 %v707_v1  ;;  %v58_v2 = vld [vmem:[%s869_s0 + $0x8] sm:$0xff]  ;;  %664 = vset.pattern.permute.xlu1 %v707_v1  ;;  %v669_v7 = vld [vmem:[%s872_s3 + $0x50] sm:$0xff]  }
   0x2   :  { %v665_v3 = vld [vmem:[%s872_s3 + $0x40] sm:$0xff]   ;;  %63 = vperm.xlu0 %663, %v57_v0   ;;  %v667_v5 = vld [vmem:[%s872_s3 + $0x48] sm:$0xff]   ;;  %v670_v8 = vld [vmem:[%s872_s3 + $0x10] sm:$0xff]  }
   0x3   :  { %v666_v4 = vld [vmem:[%s872_s3] sm:$0xff]   ;;  %577 = vmatprep.subr.bf16.mxu0 %v665_v3  ;;  %v668_v6 = vld [vmem:[%s872_s3 + $0x8] sm:$0xff]   ;;  %v671_v9 = vld [vmem:[%s872_s3 + $0x58] sm:$0xff]  }
   0x4   :  { %578 = vmatpush3.bf16.msra.mxu0 %v666_v4  ;;  %v672_v10 = vld [vmem:[%s872_s3 + $0x18] sm:$0xff]   ;;  %v673_v11 = vld [vmem:[%s872_s3 + $0x60] sm:$0xff]   ;;  %v675_v13 = vld [vmem:[%s872_s3 + $0x68] sm:$0xff]  }
   0x5   :  { %579 = vmatprep.subr.bf16.mxu0 %v667_v5  ;;  %v674_v12 = vld [vmem:[%s872_s3 + $0x20] sm:$0xff]  }
   0x6   :  { %66 = vperm.xlu0 %663, %v58_v2  }
   0x8   :  { %580 = vmatpush3.bf16.msra.mxu0 %v668_v6 }
   0x9   :  { %581 = vmatprep.subr.bf16.mxu0 %v669_v7 }
   0xc   :  { %582 = vmatpush3.bf16.msra.mxu0 %v670_v8 }
   0xd   :  { %583 = vmatprep.subr.bf16.mxu0 %v671_v9 }
  0x10   :  { %584 = vmatpush3.bf16.msra.mxu0 %v672_v10 }
  0x11   :  { %585 = vmatprep.subr.bf16.mxu0 %v673_v11 }
  0x12   :  { %12 = vsyncpa [#allocation5], 0  ;;  %v676_v14 = vld [vmem:[%s872_s3 + $0x28] sm:$0xff]   ;;  %v677_v15 = vld [vmem:[%s872_s3 + $0x70] sm:$0xff]   ;;  %v59_v19 = vlaneseq  ;;  %v708_v24 = vmov 1.0|1.0  }
  0x13   :  { %v678_v16 = vld [vmem:[%s872_s3 + $0x30] sm:$0xff]   ;;  %v679_v17 = vld [vmem:[%s872_s3 + $0x78] sm:$0xff]   ;;  %v709_v25 = vmov 0.0|0.0   ;;  %vm710_vm6 = vmmov 0   ;;  %v711_v26 = vmov 0.0   ;;  %vm54_vm7 = vcmask 254976  }
  0x14   :  { %586 = vmatpush3.bf16.msra.mxu0 %v674_v12  ;;  %v680_v18 = vld [vmem:[%s872_s3 + $0x38] sm:$0xff]   ;;  %v60_v20 = vand.u32 127, %v59_v19  ;;  %641 = vmatprep.subr.bf16.mxu1 %v709_v25  ;;  %55 = vst.msk [vmem:[#allocation2] sm:$0x3] %vm54_vm7, %v711_v26  ;;  %v712_v27 = vmov -inf   ;;  %vm331_vm8 = vcmask 261120  }
  0x15   :  { %587 = vmatprep.subr.bf16.mxu0 %v675_v13  ;;  %616 = vmatprep.mubr.msk.f32.mxu1 %vm710_vm6, %v711_v26  ;;  %56 = vst.msk [vmem:[#allocation3] sm:$0x3] %vm54_vm7, %v712_v27  ;;  %v357_v28 = vld [vmem:[%s870_s1] sm:$0x3]  ;;  %v371_v38 = vld [vmem:[%s874_s5 + $0x8] sm:$0xff]  ;;  %vm253_vm9 = vcmask 130048  }
  0x16   :  { %v61_v22 = vadd.s32 128, %v60_v20  ;;  %360 = vperm.xlu1 %664, %v357_v28   ;;  %v370_v37 = vld [vmem:[%s874_s5] sm:$0xff]  ;;  %v372_v47 = vld [vmem:[%s874_s5 + $0x10] sm:$0xff]  ;;  %v373_v48 = vld [vmem:[%s874_s5 + $0x18] sm:$0xff]  ;;  %vm348_vm10 = vcmask 1041409   ;;  %s713_s29 = smov [#allocation4]  }
  0x17   :  { %v252_v43 = vld [vmem:[%s871_s2] sm:$0x3]  ;;  %v645_v44 = vpack.c.bf16 %v371_v38, %v370_v37  ;;  %v648_v51 = vpack.c.bf16 %v373_v48, %v372_v47  ;;  %v366_v62 = vld [vmem:[%s873_s4 + $0x8] sm:$0xff]  ;;  %v367_v63 = vld [vmem:[%s873_s4 + $0x10] sm:$0xff]  ;;  %s535_s30 = sshll.u32 %s713_s29, 4  ;;  %s536_s30 = int_to_ptr.vmem [resolvable:$true] %s535_s30 }
  0x18   :  { %588 = vmatpush3.bf16.msra.mxu0 %v676_v14  ;;  %v365_v61 = vld [vmem:[%s873_s4] sm:$0xff]  ;;  %v368_v1 = vld [vmem:[%s873_s4 + $0x18] sm:$0xff]  ;;  %s683_s8 = scalar_lea.vmem %s536_s30, 32  ;;  %p688_p1 = scmp.lt.s32.totalorder %s536_s30, %s536_s30 }
  0x19   :  { %589 = vmatprep.subr.bf16.mxu0 %v677_v15  ;;  %v651_v0 = vpack.c.bf16 %v366_v62, %v365_v61  ;;  %v654_v2 = vpack.c.bf16 %v368_v1, %v367_v63  ;;  %v576_v14 = vld [vmem:[%s875_s6] ss:$0 sm:$0xff]  ;;  %p684_p0 = scmp.ne.s32.totalorder %s536_s30, %s683_s8  ;;  %p689_p2 = scmp.lt.s32.totalorder %s683_s8, %s683_s8 }
  0x1b   :  { %v251_v4 = vld [vmem:[#allocation2] sm:$0x3]  ;;  %p690_p3 = por %p689_p2, %p688_p1 }
  0x1c   :  { %590 = vmatpush3.bf16.msra.mxu0 %v678_v16  ;;  %v330_v57 = vld [vmem:[#allocation3] sm:$0x3] }
  0x1d   :  { %591 = vmatprep.subr.bf16.mxu0 %v679_v17  ;;  %p691_p4 = pnand %p690_p3, %p684_p0 }
  0x20   :  { %592 = vmatpush3.bf16.msra.mxu0 %v680_v18 }
  0x81   :  { %v64_v21 = vpop.permute.xlu0 %63 }
  0x82   :  { %vm68_vm0 = vcmp.eq.s32.totalorder %v64_v21, %v60_v20  ;;  %vm69_vm4 = vcmp.eq.s32.totalorder %v64_v21, %v61_v22 }
  0x85   :  { %v67_v23 = vpop.permute.xlu0 %66 }
  0x86   :  { %vm70_vm1 = vcmp.eq.s32.totalorder %v67_v23, %v60_v20  ;;  %vm71_vm2 = vcmp.eq.s32.totalorder %v67_v23, %v61_v22 }
  0x87   :  { %vm571_vm3 = vmpackc.low %vm70_vm1, %vm68_vm0 }
  0x88   :  { %vm569_vm5 = vmpackc.low %vm71_vm2, %vm69_vm4 }
  0x89   :  { %570 = vmatprep.mubr.msk.bf16.mxu0 %vm569_vm5, %v708_v24 }
  0x8a   :  { %572 = vmatmul.mubr.msk.bf16.vlgmr.msra.gmra.mrb[0].mxu0 %vm571_vm3, %v708_v24 }
  0x95   :  { %v361_v3 = vpop.permute.xlu1 %360 }
  0x96   :  { %681 = vrcp.f32 %v361_v3 }
  0xa0   :  { %v682_v8 = vpop.eup %681 }
 0x15d   :  { %v593_v29 = vpop.f32.mrb[0].mxu0 }
 0x15e   :  { %v594_v30 = vpop.f32.mrb[1].mxu0 }
 0x15f   :  { %v595_v31 = vadd.f32 %v594_v30, %v593_v29  ;;  %v596_v32 = vpop.f32.mrb[2].mxu0 }
 0x160   :  { %v597_v33 = vpop.f32.mrb[3].mxu0 }
 0x161   :  { %v332_v34 = vsel %vm331_vm8, %v595_v31, -inf  ;;  %v598_v35 = vadd.f32 %v597_v33, %v596_v32 }
 0x162   :  { %v333_v36 = vrot.slane %v332_v34, 4 }
 0x163   :  { %v339_v39 = vsel %vm331_vm8, %v598_v35, -inf  ;;  %v642_v40 = vpack.c.bf16 %v598_v35, %v595_v31 }
 0x164   :  { %v334_v41 = vmax.f32 %v332_v34, %v333_v36  ;;  %v340_v42 = vrot.slane %v339_v39, 4 }
 0x165   :  { %643 = vmatpush3.bf16.msra.mxu1 %v642_v40 }
 0x166   :  { %v335_v45 = vrot.slane %v334_v41, 2  ;;  %v341_v46 = vmax.f32 %v339_v39, %v340_v42  ;;  %644 = vmatprep.subr.bf16.mxu1 %v709_v25 }
 0x168   :  { %v336_v49 = vmax.f32 %v334_v41, %v335_v45  ;;  %v342_v50 = vrot.slane %v341_v46, 2  ;;  %617 = vmatmul.mubr.msk.f32.vlgmr.msra.gmra.mrb[0].mxu1 %vm253_vm9, %v252_v43 }
 0x169   :  { %646 = vmatpush3.bf16.msra.mxu1 %v645_v44  ;;  %627 = vmatprep.mubr.msk.f32.mxu1 %vm710_vm6, %v711_v26 }
 0x16a   :  { %v337_v52 = vrot.slane %v336_v49, 1  ;;  %v343_v53 = vmax.f32 %v341_v46, %v342_v50  ;;  %647 = vmatprep.subr.bf16.mxu1 %v709_v25 }
 0x16c   :  { %v344_v54 = vrot.slane %v343_v53, 1  ;;  %v338_v55 = vmax.f32 %v336_v49, %v337_v52 }
 0x16d   :  { %649 = vmatpush3.bf16.msra.mxu1 %v648_v51 }
 0x16e   :  { %v345_v56 = vmax.f32 %v343_v53, %v344_v54  ;;  %650 = vmatprep.subr.bf16.mxu1 %v709_v25 }
 0x170   :  { %v349_v58 = vsel %vm348_vm10, %v345_v56, %v338_v55 }
 0x171   :  { %v351_v59 = vmax.f32 %v330_v57, %v349_v58 }
 0x173   :  { %352 = vst.msk [vmem:[#allocation3] sm:$0x3] %vm54_vm7, %v351_v59 }
 0x17a   :  { %v369_v60 = vld [vmem:[#allocation3] sm:$0x3] }
 0x17b   :  { %628 = vmatmul.mubr.msk.f32.vlgmr.msra.gmra.mrb[2].mxu1 %vm331_vm8, %v369_v60 }
 0x17c   :  { %638 = vmatprep.mubr.msk.f32.mxu1 %vm710_vm6, %v711_v26  ;;  %652 = vmatpush3.bf16.msra.mxu1 %v651_v0 }
 0x17d   :  { %653 = vmatprep.subr.bf16.mxu1 %v709_v25 }
 0x180   :  { %655 = vmatpush3.bf16.msra.mxu1 %v654_v2 }
 0x23b   :  { %v323_v5 = vpop.f32.mrb[0].mxu1 }
 0x23c   :  { %v327_v6 = vadd.f32 %v323_v5, %v251_v4  ;;  %v618_v7 = vpop.f32.mrb[1].mxu1 }
 0x23e   :  { %329 = vst.msk [vmem:[#allocation2] sm:$0x3] %vm54_vm7, %v327_v6 }
 0x245   :  { %v356_v9 = vld [vmem:[#allocation2] sm:$0x3] }
 0x246   :  { %v364_v10 = vmul.f32 %v682_v8, %v356_v9 }
 0x248   :  { %639 = vmatmul.mubr.msk.f32.vlgmr.msra.gmra.mrb[4].mxu1 %vm331_vm8, %v364_v10 }
 0x24e   :  { %v443_v11 = vpop.f32.mrb[2].mxu1 }
 0x24f   :  { %v629_v12 = vpop.f32.mrb[3].mxu1 }
 0x31b   :  { %v516_v13 = vpop.f32.mrb[4].mxu1 }
 0x31c   :  { %v517_v15 = vadd.f32 %v516_v13, %v443_v11  ;;  %v640_v16 = vpop.f32.mrb[5].mxu1 }
 0x31e   :  { %v527_v17 = vadd.f32 %v576_v14, %v517_v15 }
 0x320   :  { %528 = vst [vmem:[#allocation4] sm:$0x3] %v527_v17 }
 0x321   :  { %694 = shalt.err (!%p691_p4)
}
 0x322   :  { %s695_s11 = scalar_lea.hbm %s876_s7, 32 }
 0x323   :  { %p696_p5 = scmp.ne.s32.totalorder %s876_s7, %s695_s11  ;;  %p699_p6 = scmp.lt.u32.totalorder %s695_s11, %s876_s7 }
 0x325   :  { %p701_p7 = pnand %p699_p6, %p696_p5 }
 0x327   :  { %704 = shalt.err (!%p701_p7)
}
 0x328   :  { %538 = dma.vmem_to_hbm [thread:$0]  %s536_s30, 32, %s876_s7, [#allocation5]  }
 0x329   :  { %705 = dma.done.wait [#allocation5], 32  }
 0x32a   :  { %706 = vsyncadd [#allocation5], 4294967264 }
 0x32b   :  { %542 = vsyncpa [#allocation5], 1 }

</bundles_post_ra>
